<compile_context>
chip_gen: v6e
topology: v6e:2x2x1
jax: 0.10.0
libtpu: 0.0.40
codegen_flags: <defaults>
</compile_context>

<pallas_src>
import functools
import math

import jax
import jax.numpy as jnp
from jax.experimental import pallas as pl
from jax.experimental.pallas import tpu as pltpu


def _round_up(n, m):
    return -(-n // m) * m


# ----------------------------------------------------------------------------
# Kernel
# ----------------------------------------------------------------------------
def qnetwork_kernel(x_ref, w1_ref, w_ref, b_ref, q_ref, *, output_size, r8):
    """One batch tile of the dueling-DQN forward pass (lane-dense layout).

    x_ref  : (in_pad, TB)  bf16 input features (rows >= input_size are zero)
    w1_ref : (H, in_pad)   bf16 layer-1 weight (cols >= input_size are zero)
    w_ref  : (3, H, H)     bf16 packed weights (layer2 | fused-head1 | fused-head2)
    b_ref  : (4, H, 1)     f32  packed biases  (column vectors, lane-broadcast)
    q_ref  : (OUT, TB)     f32  lane-dense Q-value output
    """
    # Feature trunk: Linear -> ReLU -> Linear -> ReLU.  fp32 accumulate on MXU.
    h = jnp.dot(w1_ref[...], x_ref[...],
                preferred_element_type=jnp.float32) + b_ref[0]
    h = jnp.maximum(h, 0.0)

    h = jnp.dot(w_ref[0], h.astype(jnp.bfloat16),
                preferred_element_type=jnp.float32) + b_ref[1]
    h = jnp.maximum(h, 0.0)

    # Fused head layer 1: rows [:H/2] = value hidden, rows [H/2:] = advantage hidden.
    h2 = jnp.dot(w_ref[1], h.astype(jnp.bfloat16),
                 preferred_element_type=jnp.float32) + b_ref[2]
    h2 = jnp.maximum(h2, 0.0)

    # Fused head layer 2 (block-diagonal), only the R8 useful rows:
    #   row 0 = V, rows 1..output_size = A, rest zero padding (sliced away).
    out = jnp.dot(w_ref[2, :r8, :], h2.astype(jnp.bfloat16),
                  preferred_element_type=jnp.float32) + b_ref[3, :r8]

    value = out[0:1, :]                                    # (1, TB)
    adv = out[1:1 + output_size, :]                        # (OUT, TB)

    # Dueling combine; mean over actions is a tiny sublane (XLU) reduce.
    adv_mean = jnp.mean(adv, axis=0, keepdims=True)        # (1, TB)
    q_ref[...] = value + (adv - adv_mean)


# ----------------------------------------------------------------------------
# Wrapper
# ----------------------------------------------------------------------------
def _pick_batch_tile(batch):
    # Prefer large lane-dense tiles, but keep >= 2 grid steps when possible so
    # the batch axis can shard across v7x's two TensorCores.
    for tb in (2048, 1024, 512, 256, 128):
        if batch % tb == 0 and batch // tb >= 2:
            return tb
    for tb in (2048, 1024, 512, 256, 128):
        if batch % tb == 0:
            return tb
    return batch  # small / irregular batches: one whole-batch grid step


def qnetwork_forward(x, packed):
    """x: (B, input_size) f32.  packed: output of pack_params()."""
    B, input_size = x.shape
    w1 = packed["w1"]                      # (H, in_pad) bf16
    w_slab = packed["w"]                   # (3, H, H)   bf16
    b_slab = packed["b"]                   # (4, H, 1)   f32
    H, in_pad = w1.shape
    output_size = packed["output_size"]
    assert input_size == packed["input_size"]

    # Lane-dense layout: features on sublanes, batch on lanes.  Only pad the
    # feature rows up to in_pad (padded weight columns are zero -> exact).
    x_t = x.T.astype(jnp.bfloat16)
    if in_pad != input_size:
        x_t = jnp.zeros((in_pad, B), jnp.bfloat16).at[:input_size, :].set(x_t)

    r8 = packed["r8"]
    tb = _pick_batch_tile(B)
    grid = (B // tb,)

    # Explicit VMEM budget (weights single-buffered, x/q double-buffered).
    vmem_bytes = (
        (H * in_pad + 3 * H * H) * 2       # bf16 weight slabs
        + 4 * H * 4                        # f32 bias slab
        + 2 * in_pad * tb * 2              # double-buffered bf16 x tiles
        + 2 * output_size * tb * 4         # double-buffered f32 q tiles
    )
    vmem_limit = min(max(2 * vmem_bytes, 8 << 20), 48 << 20)

    q_t = pl.pallas_call(
        functools.partial(qnetwork_kernel, output_size=output_size, r8=r8),
        out_shape=jax.ShapeDtypeStruct((output_size, B), jnp.float32),
        grid_spec=pltpu.PrefetchScalarGridSpec(
            num_scalar_prefetch=0,
            grid=grid,
            in_specs=[
                # Batch-tiled activations (double-buffered by default).
                pl.BlockSpec((in_pad, tb), lambda i: (0, i)),
                # Weight / bias slabs: constant block -> resident, single buffer.
                pl.BlockSpec(w1.shape, lambda i: (0, 0),
                             pipeline_mode=pl.Buffered(1)),
                pl.BlockSpec(w_slab.shape, lambda i: (0, 0, 0),
                             pipeline_mode=pl.Buffered(1)),
                pl.BlockSpec(b_slab.shape, lambda i: (0, 0, 0),
                             pipeline_mode=pl.Buffered(1)),
            ],
            out_specs=pl.BlockSpec((output_size, tb), lambda i: (0, i)),
        ),
        compiler_params=pltpu.CompilerParams(
            dimension_semantics=("parallel",),   # megacore sharding on v7x
            vmem_limit_bytes=vmem_limit,
        ),
    )(x_t, w1, w_slab, b_slab)

    # Back to the PyTorch-facing (B, output_size) layout.
    return q_t.T


# ----------------------------------------------------------------------------
# Parameter handling (PyTorch layout: weight (out, in), bias (out,))
# ----------------------------------------------------------------------------
def init_params(key, input_size, hidden_size, output_size):
    """PyTorch-style uniform(+-1/sqrt(fan_in)) init, PyTorch weight layout."""
    half = hidden_size // 2
    layer_dims = [
        ("w1", "b1", hidden_size, input_size),
        ("w2", "b2", hidden_size, hidden_size),
        ("wv1", "bv1", half, hidden_size),
        ("wv2", "bv2", 1, half),
        ("wa1", "ba1", half, hidden_size),
        ("wa2", "ba2", output_size, half),
    ]
    params = {}
    for wname, bname, fan_out, fan_in in layer_dims:
        key, kw, kb = jax.random.split(key, 3)
        bound = 1.0 / math.sqrt(float(fan_in))
        params[wname] = jax.random.uniform(
            kw, (fan_out, fan_in), jnp.float32, minval=-bound, maxval=bound
        )
        params[bname] = jax.random.uniform(
            kb, (fan_out,), jnp.float32, minval=-bound, maxval=bound
        )
    return params


def pack_params(params, input_size, hidden_size, output_size):
    """Pack the 6 Linear layers into bf16 weight slabs and one f32 bias slab.

    w1 : (H, in_pad)  layer-1 weight, columns >= input_size zero
    w  : (3, H, H)
      w[0]                             = W2
      w[1, :half, :] / w[1, half:, :]  = Wv1 / Wa1   (fused head layer 1)
      w[2, 0, :half]                   = Wv2          (block-diag head layer 2)
      w[2, 1:1+out, half:]             = Wa2
    b  : (4, H, 1) f32 column vectors (layer1 | layer2 | head1 | head2).
    """
    H = hidden_size
    half = H // 2
    in_pad = _round_up(input_size, 8)
    r8 = _round_up(1 + output_size, 8)
    assert 1 + output_size <= H, "packing assumes output_size + 1 <= hidden_size"
    assert r8 <= H, "head-2 row padding must fit inside hidden_size"

    w1 = jnp.zeros((H, in_pad), jnp.bfloat16)
    w1 = w1.at[:, :input_size].set(params["w1"].astype(jnp.bfloat16))

    w = jnp.zeros((3, H, H), jnp.bfloat16)
    w = w.at[0].set(params["w2"].astype(jnp.bfloat16))
    w = w.at[1, :half, :].set(params["wv1"].astype(jnp.bfloat16))
    w = w.at[1, half:, :].set(params["wa1"].astype(jnp.bfloat16))
    w = w.at[2, 0, :half].set(params["wv2"][0].astype(jnp.bfloat16))
    w = w.at[2, 1:1 + output_size, half:].set(params["wa2"].astype(jnp.bfloat16))

    b = jnp.zeros((4, H, 1), jnp.float32)
    b = b.at[0, :, 0].set(params["b1"])
    b = b.at[1, :, 0].set(params["b2"])
    b = b.at[2, :half, 0].set(params["bv1"])
    b = b.at[2, half:, 0].set(params["ba1"])
    b = b.at[3, 0, 0].set(params["bv2"][0])
    b = b.at[3, 1:1 + output_size, 0].set(params["ba2"])

    return {
        "w1": w1, "w": w, "b": b,
        "input_size": input_size, "output_size": output_size, "r8": r8,
    }


# ----------------------------------------------------------------------------
# Pure-JAX reference (mirrors the PyTorch forward exactly, fp32)
# ----------------------------------------------------------------------------
def reference_forward(x, p):
    h = jnp.maximum(x @ p["w1"].T + p["b1"], 0.0)
    h = jnp.maximum(h @ p["w2"].T + p["b2"], 0.0)
    v = jnp.maximum(h @ p["wv1"].T + p["bv1"], 0.0)
    value = v @ p["wv2"].T + p["bv2"]
    a = jnp.maximum(h @ p["wa1"].T + p["ba1"], 0.0)
    adv = a @ p["wa2"].T + p["ba2"]
    return value + (adv - jnp.mean(adv, axis=1, keepdims=True))


if __name__ == "__main__":
    batch = 2
    input_size = 16
    hidden_size = 32
    output_size = 4

    key = jax.random.PRNGKey(0)
    key, kx = jax.random.split(key)
    x = jax.random.normal(kx, (batch, input_size), jnp.float32)

    params = init_params(key, input_size, hidden_size, output_size)
    packed = pack_params(params, input_size, hidden_size, output_size)

    q = qnetwork_forward(x, packed)
    q = jax.block_until_ready(q)

    # bf16 weights/activations with fp32 accumulate -> relaxed tolerance vs the
    # fp32 reference.
    q_ref = reference_forward(x, params)
    assert q.shape == (batch, output_size)
    assert jnp.allclose(q, q_ref, atol=3e-2, rtol=3e-2), "mismatch vs reference"

    print("KERNEL_OK")
</pallas_src>

<mosaic_0001>
module attributes {stable_mosaic.version = 11 : i64} {
  func.func @qnetwork_kernel(%arg0: i32, %arg1: memref<16x2xbf16, #tpu.memory_space<vmem>>, %arg2: memref<32x16xbf16, #tpu.memory_space<vmem>>, %arg3: memref<3x32x32xbf16, #tpu.memory_space<vmem>>, %arg4: memref<4x32x1xf32, #tpu.memory_space<vmem>>, %arg5: memref<4x2xf32, #tpu.memory_space<vmem>>) attributes {dimension_semantics = [#tpu.dimension_semantics<parallel>], iteration_bounds = array<i64: 1>, scalar_prefetch = 0 : i64, scratch_operands = 0 : i64, tpu.core_type = #tpu.core_type<tc>, window_params = [{transform_indices = @transform_0, window_bounds = array<i64: 16, 2>}, {pipeline_mode = #tpu.pipeline_mode<synchronous>, transform_indices = @transform_1, window_bounds = array<i64: 32, 16>}, {pipeline_mode = #tpu.pipeline_mode<synchronous>, transform_indices = @transform_2, window_bounds = array<i64: 3, 32, 32>}, {pipeline_mode = #tpu.pipeline_mode<synchronous>, transform_indices = @transform_3, window_bounds = array<i64: 4, 32, 1>}, {transform_indices = @transform_4, window_bounds = array<i64: 4, 2>}]} {
    %c0 = arith.constant 0 : index
    %c0_0 = arith.constant 0 : index
    %0 = vector.load %arg2[%c0, %c0_0] : memref<32x16xbf16, #tpu.memory_space<vmem>>, vector<32x16xbf16>
    %c0_1 = arith.constant 0 : index
    %c0_2 = arith.constant 0 : index
    %1 = vector.load %arg1[%c0_1, %c0_2] : memref<16x2xbf16, #tpu.memory_space<vmem>>, vector<16x2xbf16>
    %cst = arith.constant dense<0.000000e+00> : vector<32x2xf32>
    %2 = tpu.matmul %0, %1, %cst {dimension_numbers = #tpu.dot_dimension_numbers<[1], [0], [0], [1], [0, 0, 1, 1], [], []>} : vector<32x16xbf16>, vector<16x2xbf16>, vector<32x2xf32> -> vector<32x2xf32>
    %c0_3 = arith.constant 0 : index
    %c0_4 = arith.constant 0 : index
    %c0_5 = arith.constant 0 : index
    %3 = vector.load %arg4[%c0_3, %c0_4, %c0_5] : memref<4x32x1xf32, #tpu.memory_space<vmem>>, vector<1x32x1xf32>
    %4 = vector.shape_cast %3 : vector<1x32x1xf32> to vector<32x1xf32>
    %5 = vector.broadcast %4 : vector<32x1xf32> to vector<32x2xf32>
    %6 = arith.addf %2, %5 : vector<32x2xf32>
    %cst_6 = arith.constant 0.000000e+00 : f32
    %7 = vector.broadcast %cst_6 : f32 to vector<32x2xf32>
    %8 = arith.maximumf %6, %7 : vector<32x2xf32>
    %c0_7 = arith.constant 0 : index
    %c0_8 = arith.constant 0 : index
    %c0_9 = arith.constant 0 : index
    %9 = vector.load %arg3[%c0_7, %c0_8, %c0_9] : memref<3x32x32xbf16, #tpu.memory_space<vmem>>, vector<1x32x32xbf16>
    %10 = vector.shape_cast %9 : vector<1x32x32xbf16> to vector<32x32xbf16>
    %11 = arith.truncf %8 : vector<32x2xf32> to vector<32x2xbf16>
    %cst_10 = arith.constant dense<0.000000e+00> : vector<32x2xf32>
    %12 = tpu.matmul %10, %11, %cst_10 {dimension_numbers = #tpu.dot_dimension_numbers<[1], [0], [0], [1], [0, 0, 1, 1], [], []>} : vector<32x32xbf16>, vector<32x2xbf16>, vector<32x2xf32> -> vector<32x2xf32>
    %c1 = arith.constant 1 : index
    %c0_11 = arith.constant 0 : index
    %c0_12 = arith.constant 0 : index
    %13 = vector.load %arg4[%c1, %c0_11, %c0_12] : memref<4x32x1xf32, #tpu.memory_space<vmem>>, vector<1x32x1xf32>
    %14 = vector.shape_cast %13 : vector<1x32x1xf32> to vector<32x1xf32>
    %15 = vector.broadcast %14 : vector<32x1xf32> to vector<32x2xf32>
    %16 = arith.addf %12, %15 : vector<32x2xf32>
    %cst_13 = arith.constant 0.000000e+00 : f32
    %17 = vector.broadcast %cst_13 : f32 to vector<32x2xf32>
    %18 = arith.maximumf %16, %17 : vector<32x2xf32>
    %c1_14 = arith.constant 1 : index
    %c0_15 = arith.constant 0 : index
    %c0_16 = arith.constant 0 : index
    %19 = vector.load %arg3[%c1_14, %c0_15, %c0_16] : memref<3x32x32xbf16, #tpu.memory_space<vmem>>, vector<1x32x32xbf16>
    %20 = vector.shape_cast %19 : vector<1x32x32xbf16> to vector<32x32xbf16>
    %21 = arith.truncf %18 : vector<32x2xf32> to vector<32x2xbf16>
    %cst_17 = arith.constant dense<0.000000e+00> : vector<32x2xf32>
    %22 = tpu.matmul %20, %21, %cst_17 {dimension_numbers = #tpu.dot_dimension_numbers<[1], [0], [0], [1], [0, 0, 1, 1], [], []>} : vector<32x32xbf16>, vector<32x2xbf16>, vector<32x2xf32> -> vector<32x2xf32>
    %c2 = arith.constant 2 : index
    %c0_18 = arith.constant 0 : index
    %c0_19 = arith.constant 0 : index
    %23 = vector.load %arg4[%c2, %c0_18, %c0_19] : memref<4x32x1xf32, #tpu.memory_space<vmem>>, vector<1x32x1xf32>
    %24 = vector.shape_cast %23 : vector<1x32x1xf32> to vector<32x1xf32>
    %25 = vector.broadcast %24 : vector<32x1xf32> to vector<32x2xf32>
    %26 = arith.addf %22, %25 : vector<32x2xf32>
    %cst_20 = arith.constant 0.000000e+00 : f32
    %27 = vector.broadcast %cst_20 : f32 to vector<32x2xf32>
    %28 = arith.maximumf %26, %27 : vector<32x2xf32>
    %c2_21 = arith.constant 2 : index
    %c0_22 = arith.constant 0 : index
    %c0_23 = arith.constant 0 : index
    %29 = vector.load %arg3[%c2_21, %c0_22, %c0_23] : memref<3x32x32xbf16, #tpu.memory_space<vmem>>, vector<1x8x32xbf16>
    %30 = vector.shape_cast %29 : vector<1x8x32xbf16> to vector<8x32xbf16>
    %31 = arith.truncf %28 : vector<32x2xf32> to vector<32x2xbf16>
    %cst_24 = arith.constant dense<0.000000e+00> : vector<8x2xf32>
    %32 = tpu.matmul %30, %31, %cst_24 {dimension_numbers = #tpu.dot_dimension_numbers<[1], [0], [0], [1], [0, 0, 1, 1], [], []>} : vector<8x32xbf16>, vector<32x2xbf16>, vector<8x2xf32> -> vector<8x2xf32>
    %c3 = arith.constant 3 : index
    %c0_25 = arith.constant 0 : index
    %c0_26 = arith.constant 0 : index
    %33 = vector.load %arg4[%c3, %c0_25, %c0_26] : memref<4x32x1xf32, #tpu.memory_space<vmem>>, vector<1x8x1xf32>
    %34 = vector.shape_cast %33 : vector<1x8x1xf32> to vector<8x1xf32>
    %35 = vector.broadcast %34 : vector<8x1xf32> to vector<8x2xf32>
    %36 = arith.addf %32, %35 : vector<8x2xf32>
    %37 = vector.extract_strided_slice %36 {offsets = [0, 0], sizes = [1, 2], strides = [1, 1]} : vector<8x2xf32> to vector<1x2xf32>
    %38 = vector.extract_strided_slice %36 {offsets = [1, 0], sizes = [4, 2], strides = [1, 1]} : vector<8x2xf32> to vector<4x2xf32>
    %cst_27 = arith.constant dense<0.000000e+00> : vector<2xf32>
    %39 = vector.multi_reduction <add>, %38, %cst_27 [0] : vector<4x2xf32> to vector<2xf32>
    %40 = vector.shape_cast %39 : vector<2xf32> to vector<1x2xf32>
    %cst_28 = arith.constant 4.000000e+00 : f32
    %41 = vector.broadcast %cst_28 : f32 to vector<1x2xf32>
    %42 = arith.divf %40, %41 : vector<1x2xf32>
    %43 = vector.broadcast %42 : vector<1x2xf32> to vector<4x2xf32>
    %44 = arith.subf %38, %43 : vector<4x2xf32>
    %45 = vector.broadcast %37 : vector<1x2xf32> to vector<4x2xf32>
    %46 = arith.addf %45, %44 : vector<4x2xf32>
    %c0_29 = arith.constant 0 : index
    %c0_30 = arith.constant 0 : index
    %47 = vector.load %arg5[%c0_29, %c0_30] : memref<4x2xf32, #tpu.memory_space<vmem>>, vector<4x2xf32>
    tpu.vector_store %arg5[%c0_29, %c0_30], %46 {strides = array<i32>} : memref<4x2xf32, #tpu.memory_space<vmem>>, vector<4x2xf32>,
    return
  }
  func.func @transform_0(%arg0: i32) -> (i32, i32) {
    %c0_i32 = arith.constant 0 : i32
    %c0_i32_0 = arith.constant 0 : i32
    return %c0_i32, %arg0 : i32, i32
  }
  func.func @transform_1(%arg0: i32) -> (i32, i32) {
    %c0_i32 = arith.constant 0 : i32
    %c0_i32_0 = arith.constant 0 : i32
    %c0_i32_1 = arith.constant 0 : i32
    return %c0_i32, %c0_i32_0 : i32, i32
  }
  func.func @transform_2(%arg0: i32) -> (i32, i32, i32) {
    %c0_i32 = arith.constant 0 : i32
    %c0_i32_0 = arith.constant 0 : i32
    %c0_i32_1 = arith.constant 0 : i32
    %c0_i32_2 = arith.constant 0 : i32
    return %c0_i32, %c0_i32_0, %c0_i32_1 : i32, i32, i32
  }
  func.func @transform_3(%arg0: i32) -> (i32, i32, i32) {
    %c0_i32 = arith.constant 0 : i32
    %c0_i32_0 = arith.constant 0 : i32
    %c0_i32_1 = arith.constant 0 : i32
    %c0_i32_2 = arith.constant 0 : i32
    return %c0_i32, %c0_i32_0, %c0_i32_1 : i32, i32, i32
  }
  func.func @transform_4(%arg0: i32) -> (i32, i32) {
    %c0_i32 = arith.constant 0 : i32
    %c0_i32_0 = arith.constant 0 : i32
    return %c0_i32, %arg0 : i32, i32
  }
}

</mosaic_0001>

<bundles_post_ra>
// kernel: tpu_custom_call.1
= control target key start
LH: loop header
LB: loop body
LE: loop exit
PB: predicated region body
PF: predicated region fallthrough
CT: control target
= control target key end

     0   :  { %vm64_vm0 = vcmask 130048   ;;  %v489_v1 = vmov 0   ;;  %vm165_vm1 = vcmask 261120   ;;  %v490_v57 = vmov 0.0   ;;  %s588_s0 = inlined_call_operand.vmem [shape: bf16[16,2], index: 0, kind: input, shape index: {}]   ;;  %s589_s1 = inlined_call_operand.vmem [shape: bf16[32,16], index: 1, kind: input, shape index: {}]   ;;  %s590_s3 = inlined_call_operand.vmem [shape: f32[4,32,1], index: 3, kind: input, shape index: {}]   ;;  %s591_s2 = inlined_call_operand.vmem [shape: bf16[3,32,32], index: 2, kind: input, shape index: {}]   ;;  %s592_s4 = inlined_call_operand.vmem [shape: f32[4,2], index: 4, kind: output, shape index: {}]  }
   0x1   :  { %v482_v0 = vld [vmem:[%s588_s0] sm:$0xff]   ;;  %480 = vset.pattern.permute.xlu0 %v489_v1  ;;  %481 = vset.pattern.permute.xlu1 %v489_v1  ;;  %v484_v3 = vld [vmem:[%s589_s1 + $0x8] sm:$0xff]   ;;  %v26_v4 = vld [vmem:[%s590_s3 + $0x10] sm:$0xff]  ;;  %vm491_vm2 = vmmov 0   ;;  %vm383_vm3 = vcmask 11264   ;;  %vm399_vm4 = vcmask 12289  }
   0x2   :  { %v483_v2 = vld [vmem:[%s589_s1] sm:$0xff]   ;;  %447 = vmatprep.subr.bf16.mxu0 %v482_v0  ;;  %40 = vperm.xlu0 %480, %v26_v4   ;;  %v27_v6 = vld [vmem:[%s590_s3 + $0x18] sm:$0xff]  ;;  %v25_v7 = vld [vmem:[%s590_s3 + $0x8] sm:$0xff] }
   0x3   :  { %448 = vmatpush3.bf16.msra.mxu0 %v482_v0  ;;  %449 = vmatprep.mubr.msk.bf16.mxu0 %vm64_vm0, %v483_v2  ;;  %v24_v5 = vld [vmem:[%s590_s3] sm:$0xff]  ;;  %v412_v8 = vld [vmem:[%s590_s3 + $0x30] sm:$0xff]  ;;  %v413_v9 = vld [vmem:[%s590_s3 + $0x38] sm:$0xff] }
   0x4   :  { %30 = vperm.xlu1 %481, %v24_v5   ;;  %v410_v10 = vld [vmem:[%s590_s3 + $0x20] sm:$0xff]  ;;  %v411_v11 = vld [vmem:[%s590_s3 + $0x28] sm:$0xff]  ;;  %v424_v12 = vld [vmem:[%s590_s3 + $0x50] sm:$0xff] }
   0x5   :  { %v425_v13 = vld [vmem:[%s590_s3 + $0x58] sm:$0xff]  ;;  %v422_v14 = vld [vmem:[%s590_s3 + $0x40] sm:$0xff]  ;;  %v423_v15 = vld [vmem:[%s590_s3 + $0x48] sm:$0xff] }
   0x6   :  { %450 = vmatmul.mubr.msk.bf16.vlgmr.msra.gmra.mxu0 %vm64_vm0, %v484_v3  ;;  %45 = vperm.xlu0 %480, %v27_v6   ;;  %v431_v16 = vld [vmem:[%s590_s3 + $0x60] sm:$0xff]  ;;  %v486_v36 = vld [vmem:[%s591_s2 + $0x8] sm:$0xff]   ;;  %v487_v37 = vld [vmem:[%s591_s2 + $0x10] sm:$0xff]  }
   0x7   :  { %v485_v17 = vld [vmem:[%s591_s2] sm:$0xff]   ;;  %465 = vmatprep.mubr.msk.bf16.mxu0 %vm165_vm1, %v487_v37  ;;  %v488_v56 = vld [vmem:[%s591_s2 + $0x18] sm:$0xff]  }
   0x8   :  { %35 = vperm.xlu1 %481, %v25_v7   ;;  %457 = vmatprep.mubr.msk.bf16.mxu1 %vm165_vm1, %v485_v17 }
   0xa   :  { %147 = vperm.xlu0 %480, %v412_v8  }
   0xc   :  { %152 = vperm.xlu1 %481, %v413_v9  }
   0xe   :  { %137 = vperm.xlu0 %480, %v410_v10  }
  0x10   :  { %142 = vperm.xlu1 %481, %v411_v11  }
  0x12   :  { %249 = vperm.xlu0 %480, %v424_v12   ;;  %v430_v12 = vld [vmem:[%s591_s2 + $0x20] sm:$0xf] }
  0x14   :  { %254 = vperm.xlu1 %481, %v425_v13  }
  0x16   :  { %239 = vperm.xlu0 %480, %v422_v14  }
  0x18   :  { %244 = vperm.xlu1 %481, %v423_v15  }
  0x1a   :  { %334 = vperm.xlu0 %480, %v431_v16  }
  0x7d   :  { %v41_v18 = vpop.permute.xlu0 %40 }
  0x7f   :  { %v31_v19 = vpop.permute.xlu1 %30 }
  0x81   :  { %v46_v23 = vpop.permute.xlu0 %45 }
  0x83   :  { %v36_v27 = vpop.permute.xlu1 %35 }
  0x85   :  { %v148_v38 = vpop.permute.xlu0 %147 }
  0x87   :  { %v153_v39 = vpop.permute.xlu1 %152 }
  0x89   :  { %v138_v43 = vpop.permute.xlu0 %137 }
  0x8b   :  { %v143_v47 = vpop.permute.xlu1 %142 }
  0x8d   :  { %v250_v58 = vpop.permute.xlu0 %249 }
  0x8f   :  { %v255_v59 = vpop.permute.xlu1 %254 }
  0x91   :  { %v240_v0 = vpop.permute.xlu0 %239 }
  0x93   :  { %v245_v2 = vpop.permute.xlu1 %244 }
  0x95   :  { %v335_v13 = vpop.permute.xlu0 %334 }
  0xc6   :  { %v451_v20 = vpop.f32.mrf.mxu0 }
  0xc7   :  { %v114_v22 = vadd.f32 %v451_v20, %v41_v18 }
  0xc8   :  { %v105_v21 = vpop.f32.mrf.mxu0 }
  0xc9   :  { %v106_v25 = vadd.f32 %v105_v21, %v31_v19  ;;  %v122_v29 = vmax.f32 %v114_v22, 0.0 }
  0xca   :  { %v452_v24 = vpop.f32.mrf.mxu0 }
  0xcb   :  { %v117_v26 = vadd.f32 %v452_v24, %v46_v23  ;;  %v120_v32 = vmax.f32 %v106_v25, 0.0  ;;  %v394_v23 = vlaneseq }
  0xcc   :  { %v108_v28 = vpop.f32.mrf.mxu0 }
  0xcd   :  { %v123_v30 = vmax.f32 %v117_v26, 0.0  ;;  %v109_v31 = vadd.f32 %v108_v28, %v36_v27  ;;  %v395_v26 = vshrl.u32 %v394_v23, 7 }
  0xcf   :  { %v121_v33 = vmax.f32 %v109_v31, 0.0  ;;  %v129_v34 = vpack.c.bf16 %v123_v30, %v122_v29  ;;  %v396_v29 = vsub.s32 0, %v395_v26 }
  0xd1   :  { %v128_v35 = vpack.c.bf16 %v121_v33, %v120_v32  ;;  %453 = vmatprep.subr.bf16.mxu1 %v129_v34 }
  0xd2   :  { %454 = vmatpush3.bf16.msra.mxu1 %v129_v34 }
  0xd3   :  { %455 = vmatprep.subr.bf16.mxu1 %v128_v35 }
  0xd6   :  { %456 = vmatpush3.bf16.msra.mxu1 %v128_v35 }
  0xd7   :  { %469 = vmatprep.subr.bf16.mxu1 %v490_v57 }
  0xd9   :  { %458 = vmatmul.mubr.msk.bf16.vlgmr.msra.gmra.mxu1 %vm165_vm1, %v486_v36 }
  0xda   :  { %473 = vmatprep.mubr.msk.bf16.mxu1 %vm491_vm2, %v490_v57 }
 0x199   :  { %v459_v40 = vpop.f32.mrf.mxu1 }
 0x19a   :  { %v215_v42 = vadd.f32 %v459_v40, %v148_v38 }
 0x19b   :  { %v206_v41 = vpop.f32.mrf.mxu1 }
 0x19c   :  { %v207_v45 = vadd.f32 %v206_v41, %v138_v43  ;;  %v223_v49 = vmax.f32 %v215_v42, 0.0 }
 0x19d   :  { %v460_v44 = vpop.f32.mrf.mxu1 }
 0x19e   :  { %v218_v46 = vadd.f32 %v460_v44, %v153_v39  ;;  %v221_v52 = vmax.f32 %v207_v45, 0.0 }
 0x19f   :  { %v209_v48 = vpop.f32.mrf.mxu1 }
 0x1a0   :  { %v224_v50 = vmax.f32 %v218_v46, 0.0  ;;  %v210_v51 = vadd.f32 %v209_v48, %v143_v47 }
 0x1a2   :  { %v231_v53 = vpack.c.bf16 %v224_v50, %v223_v49  ;;  %v222_v54 = vmax.f32 %v210_v51, 0.0 }
 0x1a4   :  { %v230_v55 = vpack.c.bf16 %v222_v54, %v221_v52  ;;  %461 = vmatprep.subr.bf16.mxu0 %v231_v53 }
 0x1a5   :  { %462 = vmatpush3.bf16.msra.mxu0 %v231_v53 }
 0x1a6   :  { %463 = vmatprep.subr.bf16.mxu0 %v230_v55 }
 0x1a9   :  { %464 = vmatpush3.bf16.msra.mxu0 %v230_v55 }
 0x1ac   :  { %466 = vmatmul.mubr.msk.bf16.vlgmr.msra.gmra.mxu0 %vm165_vm1, %v488_v56 }
 0x26c   :  { %v467_v60 = vpop.f32.mrf.mxu0 }
 0x26d   :  { %v316_v62 = vadd.f32 %v467_v60, %v250_v58 }
 0x26e   :  { %v307_v61 = vpop.f32.mrf.mxu0 }
 0x26f   :  { %v324_v4 = vmax.f32 %v316_v62, 0.0  ;;  %v308_v5 = vadd.f32 %v307_v61, %v240_v0 }
 0x270   :  { %v468_v63 = vpop.f32.mrf.mxu0 }
 0x271   :  { %v319_v1 = vadd.f32 %v468_v63, %v255_v59  ;;  %v322_v10 = vmax.f32 %v308_v5, 0.0 }
 0x272   :  { %v310_v3 = vpop.f32.mrf.mxu0 }
 0x273   :  { %v325_v6 = vmax.f32 %v319_v1, 0.0  ;;  %v311_v7 = vadd.f32 %v310_v3, %v245_v2 }
 0x275   :  { %v329_v8 = vpack.c.bf16 %v325_v6, %v324_v4  ;;  %v323_v9 = vmax.f32 %v311_v7, 0.0 }
 0x277   :  { %470 = vmatpush3.bf16.msra.mxu1 %v329_v8  ;;  %v328_v11 = vpack.c.bf16 %v323_v9, %v322_v10 }
 0x278   :  { %471 = vmatprep.subr.bf16.mxu1 %v490_v57 }
 0x27b   :  { %472 = vmatpush3.bf16.msra.mxu1 %v328_v11 }
 0x27e   :  { %474 = vmatmul.mubr.msk.bf16.vlgmr.msra.gmra.mxu1 %vm165_vm1, %v430_v12 }
 0x33e   :  { %v374_v14 = vpop.f32.mrf.mxu1 }
 0x33f   :  { %v375_v15 = vadd.f32 %v374_v14, %v335_v13 }
 0x340   :  { %v475_v16 = vpop.f32.mrf.mxu1 }
 0x341   :  { %v381_v17 = vrot.slane %v375_v15, 1  ;;  %v397_v32 = vrot.slane %v375_v15, %v396_v29 }
 0x342   :  { %v377_v18 = vpop.f32.mrf.mxu1 }
 0x343   :  { %v384_v19 = vsel %vm383_vm3, %v381_v17, 0.0 }
 0x344   :  { %v385_v20 = vrot.slane %v384_v19, 4  ;;  %v476_v21 = vpop.f32.mrf.mxu1 }
 0x346   :  { %v386_v22 = vadd.f32 %v385_v20, %v384_v19 }
 0x348   :  { %v387_v24 = vrot.slane %v386_v22, 2 }
 0x34a   :  { %v388_v25 = vadd.f32 %v387_v24, %v386_v22 }
 0x34c   :  { %v389_v27 = vrot.slane %v388_v25, 1 }
 0x34e   :  { %v390_v28 = vadd.f32 %v389_v27, %v388_v25 }
 0x350   :  { %v392_v30 = vmul.f32 0.25, %v390_v28 }
 0x352   :  { %v393_v31 = vsub.f32 %v375_v15, %v392_v30 }
 0x354   :  { %v398_v33 = vadd.f32 %v397_v32, %v393_v31 }
 0x356   :  { %400 = vst.msk [vmem:[%s592_s4 - $0x1] sm:$0x1e] %vm399_vm4, %v398_v33 }

</bundles_post_ra>
